<compile_context>
chip_gen: v5e
topology: v5e:2x2
jax: 0.10.0
libtpu: 0.0.40
codegen_flags: <defaults>
</compile_context>

<pallas_src>
import jax
import jax.numpy as jnp
from jax.experimental import pallas as pl
from jax.experimental.pallas import tpu as pltpu


def _round_up(x, m):
    return ((x + m - 1) // m) * m


def _quantile_head_kernel(x_ref, w_ref, b_ref, o_ref):
    # x_ref: (TB, S, D)   raw input tile (full sequence for this batch tile)
    # w_ref: (D, N_pad)   fused, lane-padded weights for all Q heads (resident)
    # b_ref: (1, N_pad)   fused bias (resident)
    # o_ref: (TB, N_pad)  lane-dense output slab
    last = x_ref.shape[1] - 1
    x_last = x_ref[:, last, :]                              # (TB, D) last timestep
    y = jnp.dot(x_last, w_ref[...], preferred_element_type=jnp.float32)
    o_ref[...] = (y + b_ref[...]).astype(o_ref.dtype)


def prepare_params(weights, biases):
    """One-time fusion of the Q per-quantile Linear layers.

    weights: (Q, D, P), biases: (Q, P)
    Returns:
      w_fused: (D, N_pad) f32, column index p*Q + q (zero-padded lanes)
      b_fused: (1, N_pad) f32
    Call this once when parameters are set; the forward pass only runs the
    fused matmul (no per-call transpose/pad glue).
    """
    Q, D, P = weights.shape
    N = P * Q
    # 128-lane alignment always (unmasked stores, valid on v5e); align to 256
    # when wider for better MXU fill on v6e/v7x.
    N_pad = _round_up(N, 256) if N > 128 else 128
    w = jnp.transpose(weights, (1, 2, 0)).reshape(D, N)     # col p*Q + q
    b = jnp.transpose(biases, (1, 0)).reshape(1, N)
    w = jnp.pad(w, ((0, 0), (0, N_pad - N)))
    b = jnp.pad(b, ((0, 0), (0, N_pad - N)))
    return w, b


def quantile_regression_head(x, w_fused, b_fused, pred_len, num_quantiles):
    """x: (B, S, D); fused params from prepare_params -> (B, pred_len, Q)."""
    B, S, D = x.shape
    P, Q = pred_len, num_quantiles
    N = P * Q
    N_pad = w_fused.shape[1]

    # Batch tiling: exact tile for tiny batches (no padding at all); otherwise
    # 8-aligned tiles up to 256 rows so multiple "parallel" grid steps exist
    # for megacore sharding on v7x. The kernel output buffer is allocated
    # already grid-padded, so output blocks are never partial.
    if B <= 8:
        TB = B
    else:
        TB = min(256, _round_up(B, 8))
    nb = pl.cdiv(B, TB)
    B_pad = nb * TB

    out_pad = pl.pallas_call(
        _quantile_head_kernel,
        out_shape=jax.ShapeDtypeStruct((B_pad, N_pad), x.dtype),
        grid=(nb,),
        in_specs=[
            # Stream a batch tile of the raw (B, S, D) input; the last-timestep
            # slice happens inside the kernel (no x_last HBM materialization).
            pl.BlockSpec((TB, S, D), lambda i: (i, 0, 0)),
            # Constant index maps -> weight/bias blocks stay resident in VMEM
            # across all batch tiles.
            pl.BlockSpec((D, N_pad), lambda i: (0, 0)),
            pl.BlockSpec((1, N_pad), lambda i: (0, 0)),
        ],
        out_specs=pl.BlockSpec((TB, N_pad), lambda i: (i, 0)),
        compiler_params=pltpu.CompilerParams(
            dimension_semantics=("parallel",)),
    )(x, w_fused, b_fused)

    # Layout-only glue: drop padding and do a *contiguous* reshape. Thanks to
    # the p*Q + q column order, no transpose is needed to match
    # torch.stack([head(x) for head in heads], dim=-1).
    return out_pad[:B, :N].reshape(B, P, Q)


def init_params(key, d_model, pred_len, num_quantiles):
    # Deterministic init mimicking nn.Linear default (uniform in +-1/sqrt(fan_in)).
    kw, kb = jax.random.split(key)
    bound = 1.0 / (d_model ** 0.5)
    weights = jax.random.uniform(
        kw, (num_quantiles, d_model, pred_len), jnp.float32, -bound, bound)
    biases = jax.random.uniform(
        kb, (num_quantiles, pred_len), jnp.float32, -bound, bound)
    return weights, biases


if __name__ == "__main__":
    B, S, D, P = 2, 8, 32, 16
    quantiles = [0.1, 0.5, 0.9]
    Q = len(quantiles)

    key = jax.random.PRNGKey(0)
    kx, kp = jax.random.split(key)
    x = jax.random.normal(kx, (B, S, D), jnp.float32)
    weights, biases = init_params(kp, D, P, Q)

    # One-time parameter fusion (done at parameter-set time, not per forward).
    w_fused, b_fused = prepare_params(weights, biases)
    w_fused, b_fused = jax.block_until_ready((w_fused, b_fused))

    fwd = jax.jit(quantile_regression_head, static_argnums=(3, 4))
    out = fwd(x, w_fused, b_fused, P, Q)
    out = jax.block_until_ready(out)

    # Reference check in plain JAX (same math as the PyTorch module).
    x_last = x[:, -1, :]
    ref = jnp.stack([x_last @ weights[q] + biases[q] for q in range(Q)], axis=-1)
    assert out.shape == (B, P, Q), out.shape
    assert jnp.allclose(out, ref, atol=1e-5, rtol=1e-5)

    print("KERNEL_OK")
</pallas_src>

<mosaic_0001>
module attributes {stable_mosaic.version = 11 : i64} {
  func.func @_quantile_head_kernel(%arg0: i32, %arg1: memref<2x8x32xf32, #tpu.memory_space<vmem>>, %arg2: memref<32x128xf32, #tpu.memory_space<vmem>>, %arg3: memref<1x128xf32, #tpu.memory_space<vmem>>, %arg4: memref<2x128xf32, #tpu.memory_space<vmem>>) attributes {dimension_semantics = [#tpu.dimension_semantics<parallel>], iteration_bounds = array<i64: 1>, scalar_prefetch = 0 : i64, scratch_operands = 0 : i64, tpu.core_type = #tpu.core_type<tc>, window_params = [{transform_indices = @transform_0, window_bounds = array<i64: 2, 8, 32>}, {pipeline_mode = #tpu.pipeline_mode<synchronous>, transform_indices = @transform_1, window_bounds = array<i64: 32, 128>}, {pipeline_mode = #tpu.pipeline_mode<synchronous>, transform_indices = @transform_2, window_bounds = array<i64: 1, 128>}, {transform_indices = @transform_3, window_bounds = array<i64: 2, 128>}]} {
    %c0 = arith.constant 0 : index
    %c7 = arith.constant 7 : index
    %c0_0 = arith.constant 0 : index
    %0 = vector.load %arg1[%c0, %c7, %c0_0] : memref<2x8x32xf32, #tpu.memory_space<vmem>>, vector<2x1x32xf32>
    %1 = vector.shape_cast %0 : vector<2x1x32xf32> to vector<2x32xf32>
    %c0_1 = arith.constant 0 : index
    %c0_2 = arith.constant 0 : index
    %2 = vector.load %arg2[%c0_1, %c0_2] : memref<32x128xf32, #tpu.memory_space<vmem>>, vector<32x128xf32>
    %cst = arith.constant dense<0.000000e+00> : vector<2x128xf32>
    %3 = tpu.matmul %1, %2, %cst {dimension_numbers = #tpu.dot_dimension_numbers<[1], [0], [0], [1], [0, 0, 1, 1], [], []>} : vector<2x32xf32>, vector<32x128xf32>, vector<2x128xf32> -> vector<2x128xf32>
    %c0_3 = arith.constant 0 : index
    %c0_4 = arith.constant 0 : index
    %4 = vector.load %arg3[%c0_3, %c0_4] : memref<1x128xf32, #tpu.memory_space<vmem>>, vector<1x128xf32>
    %5 = vector.broadcast %4 : vector<1x128xf32> to vector<2x128xf32>
    %6 = arith.addf %3, %5 : vector<2x128xf32>
    %c0_5 = arith.constant 0 : index
    %c0_6 = arith.constant 0 : index
    %7 = vector.load %arg4[%c0_5, %c0_6] : memref<2x128xf32, #tpu.memory_space<vmem>>, vector<2x128xf32>
    tpu.vector_store %arg4[%c0_5, %c0_6], %6 {strides = array<i32>} : memref<2x128xf32, #tpu.memory_space<vmem>>, vector<2x128xf32>,
    return
  }
  func.func @transform_0(%arg0: i32) -> (i32, i32, i32) {
    %c0_i32 = arith.constant 0 : i32
    %c0_i32_0 = arith.constant 0 : i32
    %c0_i32_1 = arith.constant 0 : i32
    return %arg0, %c0_i32, %c0_i32_0 : i32, i32, i32
  }
  func.func @transform_1(%arg0: i32) -> (i32, i32) {
    %c0_i32 = arith.constant 0 : i32
    %c0_i32_0 = arith.constant 0 : i32
    %c0_i32_1 = arith.constant 0 : i32
    return %c0_i32, %c0_i32_0 : i32, i32
  }
  func.func @transform_2(%arg0: i32) -> (i32, i32) {
    %c0_i32 = arith.constant 0 : i32
    %c0_i32_0 = arith.constant 0 : i32
    %c0_i32_1 = arith.constant 0 : i32
    return %c0_i32, %c0_i32_0 : i32, i32
  }
  func.func @transform_3(%arg0: i32) -> (i32, i32) {
    %c0_i32 = arith.constant 0 : i32
    %c0_i32_0 = arith.constant 0 : i32
    return %arg0, %c0_i32 : i32, i32
  }
}

</mosaic_0001>

<bundles_post_ra>
// kernel: quantile_regression_head.1
= control target key start
LH: loop header
LB: loop body
LE: loop exit
PB: predicated region body
PF: predicated region fallthrough
CT: control target
= control target key end

     0   :  { %8 = vsyncpa [#allocation3], 0  ;;  %s185_s0 = inlined_call_operand.hbm [shape: f32[2,8,32], index: 0, kind: input, shape index: {}]   ;;  %s186_s1 = inlined_call_operand.hbm [shape: f32[32,128], index: 1, kind: input, shape index: {}]   ;;  %s187_s2 = inlined_call_operand.vmem [shape: f32[1,128], index: 2, kind: input, shape index: {}]   ;;  %s188_s3 = inlined_call_operand.vmem [shape: f32[2,128], index: 3, kind: output, shape index: {}]  }
   0x1   :  { %s14_s14 = sshll.u32 %s185_s0, 4  ;;  %s15_s14 = int_to_ptr.hbm [resolvable:$true] %s14_s14 }
   0x2   :  { %9 = vsyncpa [#allocation5], 0  ;;  %s149_s15 = smov [#allocation2]   ;;  %s27_s19 = sshll.u32 %s186_s1, 4  ;;  %s28_s19 = int_to_ptr.hbm [resolvable:$true] %s27_s19 }
   0x3   :  { %s16_s16 = sshll.u32 %s149_s15, 4  ;;  %s150_s20 = smov 128   ;;  %s17_s16 = int_to_ptr.vmem [resolvable:$true] %s16_s16 }
   0x4   :  { %s151_s21 = smov 8   ;;  %s152_s22 = smov [#allocation4]  }
   0x5   :  { %22 = dma.hbm_to_vmem [thread:$0]  %s15_s14, 256, %s17_s16, [#allocation3], %s150_s20, %s150_s20, %s151_s21  }
   0x6   :  { %s29_s23 = sshll.u32 %s152_s22, 4  ;;  %s30_s23 = int_to_ptr.vmem [resolvable:$true] %s29_s23 }
   0x7   :  { %35 = dma.hbm_to_vmem [thread:$0]  %s28_s19, 512, %s30_s23, [#allocation5], %s150_s20, %s150_s20, %s151_s21  }
   0x8   :  { %145 = dma.done.wait [#allocation3], 256  }
   0x9   :  { %146 = vsyncadd [#allocation3], 4294967040 }
   0xa   :  { %147 = dma.done.wait [#allocation5], 512  }
   0xb   :  { %148 = vsyncadd [#allocation5], 4294966784  ;;  %v51_v0 = vld [vmem:[#allocation4 + $0x18] sm:$0xff]  ;;  %v50_v1 = vld [vmem:[#allocation4 + $0x10] sm:$0xff]  ;;  %vm59_vm0 = vcmask 1041409   ;;  %vm61_vm1 = vcmask 261120  }
   0xc   :  { %76 = vmatpush.msra.mxu0 %v51_v0  ;;  %v47_v2 = vld [vmem:[#allocation2 + $0xf] sm:$0x1]  ;;  %v49_v3 = vld [vmem:[#allocation4 + $0x8] sm:$0xff]  ;;  %v46_v4 = vld [vmem:[#allocation2 + $0x7] sm:$0x1] }
   0xd   :  { %v58_v5 = vrot.slane %v47_v2, 7  ;;  %v48_v6 = vld [vmem:[#allocation4] sm:$0xff]  ;;  %v96_v8 = vld [vmem:[%s187_s2] ss:$0 sm:$0xff] }
   0xe   :  { %77 = vmatpush.msra.mxu0 %v50_v1 }
   0xf   :  { %v60_v7 = vsel %vm59_vm0, %v58_v5, %v46_v4 }
  0x10   :  { %78 = vmatpush.msra.mxu0 %v49_v3 }
  0x12   :  { %79 = vmatpush.msra.mxu0 %v48_v6 }
  0x13   :  { %91 = vmatmul.msk.f32.vlgmr.msra.gmra.mxu0 %vm61_vm1, %v60_v7 }
  0x90   :  { %v81_v9 = vpop.f32.mrf.mxu0 }
  0x91   :  { %v82_v10 = vadd.f32 %v96_v8, %v81_v9 }
  0x93   :  { %84 = vst [vmem:[%s188_s3] sm:$0x3] %v82_v10 }
  0x94   :  { %89 = vsyncpa [#allocation3], 1 }
  0x95   :  { %90 = vsyncpa [#allocation5], 1 }

</bundles_post_ra>
